<compile_context>
chip_gen: v7x
topology: tpu7x:2x2x1
jax: 0.10.0
libtpu: 0.0.40
codegen_flags: <defaults>
</compile_context>

<pallas_src>
import jax
import jax.numpy as jnp
from jax.experimental import pallas as pl
from jax.experimental.pallas import tpu as pltpu


def _noise_injection_kernel(x_ref, n_ref, s_ref, o_ref):
    # x_ref: VMEM (TB*C, THW)  input tile
    # n_ref: VMEM (TB,   THW)  per-batch noise rows for this tile
    # s_ref: VMEM (TB*C, TB)   broadcast/scale matrix (same every step)
    # o_ref: VMEM (TB*C, THW)  output tile
    #
    # scaled[t*C + c, :] = weight[c] * noise[t, :]  (channel broadcast + scale)
    scaled = jnp.dot(s_ref[...], n_ref[...], preferred_element_type=jnp.float32)
    o_ref[...] = (x_ref[...].astype(jnp.float32) + scaled).astype(o_ref.dtype)


def _vmem_budget(block_cap_hint):
    """Generation-aware scoped-VMEM limit and per-block byte cap."""
    phys = 64 << 20                     # conservative fallback (v7x per-TC VMEM)
    try:
        phys = int(pltpu.get_tpu_info().vmem_capacity_bytes)
    except Exception:
        pass                            # CPU / interpret harness: keep fallback
    vmem_limit = min(phys * 3 // 4, 96 << 20)      # 96 MiB on v5e/v6e, 48 on v7x
    if block_cap_hint is not None:
        block_cap = int(block_cap_hint)
    else:
        block_cap = max(1 << 20, phys // 16)       # ~8 MiB v5e/v6e, ~4 MiB v7x
    return vmem_limit, block_cap


def _pick_lane_tile(hwp, target):
    """Largest multiple of 128 that divides hwp and is <= max(target, 128)."""
    target = max(128, target)
    best = 128                                     # hwp is always a multiple of 128
    for t in range(128, hwp + 1, 128):
        if hwp % t == 0 and t <= target:
            best = t
    return best


def _pick_batch_tile(batch, channels, thw, itemsize, block_cap):
    """Largest divisor of `batch` that is either == batch or a multiple of 8
    (dense sublanes, no dead rows in S) and fits the block byte cap."""
    cands = [d for d in range(batch, 0, -1)
             if batch % d == 0 and (d == batch or d % 8 == 0)]
    for d in cands:
        if d * channels * thw * itemsize <= block_cap:
            return d
    return cands[-1]                               # smallest legal; caller shrinks THW


def noise_injection_fwd(x, weight, noise, *, lane_tile_target=1024,
                        max_x_block_bytes=None):
    """out = x + weight * noise.

    x:      (B, C, H, W)
    weight: (1, C, 1, 1)
    noise:  (B, 1, H, W) (or (B, H, W)) Gaussian noise, shared across channels.
    """
    B, C, H, W = x.shape
    HW = H * W
    itemsize = jnp.dtype(x.dtype).itemsize

    vmem_limit, block_cap = _vmem_budget(max_x_block_bytes)

    # ---- lane axis: pad H*W to a multiple of 128 ----------------------------
    HWp = ((HW + 127) // 128) * 128
    x2 = x.reshape(B * C, HW)
    n2 = noise.reshape(B, HW).astype(jnp.float32)
    if HWp != HW:
        x2 = jnp.pad(x2, ((0, 0), (0, HWp - HW)))
        n2 = jnp.pad(n2, ((0, 0), (0, HWp - HW)))

    # ---- joint lane / batch tile selection under the VMEM block cap ---------
    THW = _pick_lane_tile(HWp, lane_tile_target)
    while THW > 128 and C * THW * itemsize > block_cap:   # wide-channel guard
        THW = _pick_lane_tile(HWp, THW - 128)

    TB = _pick_batch_tile(B, C, THW, itemsize, block_cap)
    while TB * C * THW * itemsize > block_cap and THW > 128:
        THW = _pick_lane_tile(HWp, THW - 128)
        TB = _pick_batch_tile(B, C, THW, itemsize, block_cap)

    # v7x megacore: if the batch grid axis is degenerate, bias the lane axis to
    # an even number of steps so both TensorCores get work.
    if B // TB == 1 and (HWp // THW) % 2 == 1 and THW % 256 == 0:
        THW //= 2

    TBC = TB * C

    # S[t*C + c, t] = weight[c]; folds channel-broadcast + scale into the MXU.
    w_col = weight.reshape(C, 1).astype(jnp.float32)
    S = jnp.kron(jnp.eye(TB, dtype=jnp.float32), w_col)       # (TBC, TB)

    grid = (B // TB, HWp // THW)

    cost = pl.CostEstimate(
        flops=int(2 * B * C * HWp * TB + B * C * HWp),
        transcendentals=0,
        bytes_accessed=int(2 * B * C * HWp * itemsize + B * HWp * 4 + S.size * 4),
    )

    out2 = pl.pallas_call(
        _noise_injection_kernel,
        out_shape=jax.ShapeDtypeStruct((B * C, HWp), x.dtype),
        grid_spec=pltpu.PrefetchScalarGridSpec(
            num_scalar_prefetch=0,
            grid=grid,
            in_specs=[
                pl.BlockSpec((TBC, THW), lambda bi, hi: (bi, hi)),
                pl.BlockSpec((TB, THW), lambda bi, hi: (bi, hi)),
                pl.BlockSpec((TBC, TB), lambda bi, hi: (0, 0)),
            ],
            out_specs=pl.BlockSpec((TBC, THW), lambda bi, hi: (bi, hi)),
        ),
        compiler_params=pltpu.CompilerParams(
            dimension_semantics=("parallel", "parallel"),
            vmem_limit_bytes=vmem_limit,
        ),
        cost_estimate=cost,
    )(x2, n2, S)

    if HWp != HW:
        out2 = out2[:, :HW]
    return out2.reshape(B, C, H, W)


def noise_injection(x, weight, key, **kwargs):
    """PyTorch-equivalent forward: fresh Gaussian noise per call (per key)."""
    B, _, H, W = x.shape
    noise = jax.random.normal(key, (B, 1, H, W), dtype=jnp.float32)
    return noise_injection_fwd(x, weight, noise, **kwargs)


if __name__ == "__main__":
    key = jax.random.PRNGKey(0)
    kx, kn, kn2 = jax.random.split(key, 3)
    B, C, H, W = 2, 4, 16, 16
    x = jax.random.normal(kx, (B, C, H, W), dtype=jnp.float32)

    # 1) PyTorch init: weight = zeros -> forward must be the identity (exact).
    w0 = jnp.zeros((1, C, 1, 1), dtype=jnp.float32)
    out0 = jax.block_until_ready(noise_injection(x, w0, kn))
    assert out0.shape == (B, C, H, W)
    assert jnp.allclose(out0, x, rtol=0.0, atol=1e-6), "zero-weight path is not identity"

    # 2) Nonzero per-channel weight vs plain-JAX reference with known noise.
    w1 = jnp.arange(1, C + 1, dtype=jnp.float32).reshape(1, C, 1, 1)
    noise = jax.random.normal(kn, (B, 1, H, W), dtype=jnp.float32)
    out1 = jax.block_until_ready(noise_injection_fwd(x, w1, noise))
    ref = x + w1 * noise
    err = float(jnp.max(jnp.abs(out1 - ref)))
    # DEFAULT-precision MXU passes the noise through ~bf16 rounding.
    assert err < 0.1, f"mismatch vs reference: max abs err {err}"

    # 3) Defining property of the op: one noise map per (b, h, w), shared by all C.
    unit = jax.block_until_ready(
        noise_injection_fwd(jnp.zeros_like(x),
                            jnp.ones((1, C, 1, 1), jnp.float32), noise))
    assert jnp.allclose(unit, unit[:, :1], atol=1e-6), "noise not shared across channels"

    # 4) Same key -> identical output; different key -> different noise.
    out1a = jax.block_until_ready(noise_injection(x, w1, kn))
    out1b = jax.block_until_ready(noise_injection(x, w1, kn))
    assert jnp.array_equal(out1a, out1b), "forward is not deterministic per key"
    outd = jax.block_until_ready(noise_injection(x, w1, kn2))
    assert not jnp.allclose(outd, out1a), "different keys produced identical noise"

    # 5) Statistical sanity of the injected noise (w = 1, x = 0 path).
    m = float(jnp.mean(unit[:, 0]))
    s = float(jnp.std(unit[:, 0]))
    assert abs(m) < 0.3, f"noise mean off: {m}"
    assert abs(s - 1.0) < 0.3, f"noise std off: {s}"

    print("KERNEL_OK")
</pallas_src>

<mosaic_0001>
module attributes {stable_mosaic.version = 11 : i64} {
  func.func @_noise_injection_kernel(%arg0: i32, %arg1: i32, %arg2: memref<8x128xf32, #tpu.memory_space<vmem>>, %arg3: memref<2x128xf32, #tpu.memory_space<vmem>>, %arg4: memref<8x2xf32, #tpu.memory_space<vmem>>, %arg5: memref<8x128xf32, #tpu.memory_space<vmem>>) attributes {dimension_semantics = [#tpu.dimension_semantics<parallel>, #tpu.dimension_semantics<parallel>], iteration_bounds = array<i64: 1, 2>, scalar_prefetch = 0 : i64, scratch_operands = 0 : i64, tpu.core_type = #tpu.core_type<tc>, window_params = [{transform_indices = @transform_0, window_bounds = array<i64: 8, 128>}, {transform_indices = @transform_1, window_bounds = array<i64: 2, 128>}, {pipeline_mode = #tpu.pipeline_mode<synchronous>, transform_indices = @transform_2, window_bounds = array<i64: 8, 2>}, {transform_indices = @transform_3, window_bounds = array<i64: 8, 128>}]} {
    %c0 = arith.constant 0 : index
    %c0_0 = arith.constant 0 : index
    %0 = vector.load %arg4[%c0, %c0_0] : memref<8x2xf32, #tpu.memory_space<vmem>>, vector<8x2xf32>
    %c0_1 = arith.constant 0 : index
    %c0_2 = arith.constant 0 : index
    %1 = vector.load %arg3[%c0_1, %c0_2] : memref<2x128xf32, #tpu.memory_space<vmem>>, vector<2x128xf32>
    %cst = arith.constant dense<0.000000e+00> : vector<8x128xf32>
    %2 = tpu.matmul %0, %1, %cst {dimension_numbers = #tpu.dot_dimension_numbers<[1], [0], [0], [1], [0, 0, 1, 1], [], []>} : vector<8x2xf32>, vector<2x128xf32>, vector<8x128xf32> -> vector<8x128xf32>
    %c0_3 = arith.constant 0 : index
    %c0_4 = arith.constant 0 : index
    %3 = vector.load %arg2[%c0_3, %c0_4] : memref<8x128xf32, #tpu.memory_space<vmem>>, vector<8x128xf32>
    %4 = arith.addf %3, %2 : vector<8x128xf32>
    %c0_5 = arith.constant 0 : index
    %c0_6 = arith.constant 0 : index
    %5 = vector.load %arg5[%c0_5, %c0_6] : memref<8x128xf32, #tpu.memory_space<vmem>>, vector<8x128xf32>
    tpu.vector_store %arg5[%c0_5, %c0_6], %4 {strides = array<i32>} : memref<8x128xf32, #tpu.memory_space<vmem>>, vector<8x128xf32>,
    return
  }
  func.func @transform_0(%arg0: i32, %arg1: i32) -> (i32, i32) {
    %c0_i32 = arith.constant 0 : i32
    return %arg0, %arg1 : i32, i32
  }
  func.func @transform_1(%arg0: i32, %arg1: i32) -> (i32, i32) {
    %c0_i32 = arith.constant 0 : i32
    return %arg0, %arg1 : i32, i32
  }
  func.func @transform_2(%arg0: i32, %arg1: i32) -> (i32, i32) {
    %c0_i32 = arith.constant 0 : i32
    %c0_i32_0 = arith.constant 0 : i32
    %c0_i32_1 = arith.constant 0 : i32
    return %c0_i32, %c0_i32_0 : i32, i32
  }
  func.func @transform_3(%arg0: i32, %arg1: i32) -> (i32, i32) {
    %c0_i32 = arith.constant 0 : i32
    return %arg0, %arg1 : i32, i32
  }
}

</mosaic_0001>

<bundles_post_ra>
// kernel: tpu_custom_call.1
= control target key start
LH: loop header
LB: loop body
LE: loop exit
PB: predicated region body
PF: predicated region fallthrough
CT: control target
= control target key end

     0   :  { %8 = vsyncpa [#allocation3], 0  ;;  %s839_s0 = inlined_call_operand.hbm [shape: f32[8,256], index: 0, kind: input, shape index: {}]   ;;  %s840_s1 = inlined_call_operand.vmem [shape: f32[2,256], index: 1, kind: input, shape index: {}]   ;;  %s841_s2 = inlined_call_operand.vmem [shape: f32[8,2], index: 2, kind: input, shape index: {}]   ;;  %s842_s3 = inlined_call_operand.hbm [shape: f32[8,256], index: 3, kind: output, shape index: {}]  }
   0x1   :  { %10 = vsyncpa [#allocation3 + $0x1], 0 }
   0x2   :  { %11 = vsyncpa [#allocation4], 0 }
   0x3   :  { %13 = vsyncpa [#allocation4 + $0x1], 0  ;;  %s659_s12 = smov 0   ;;  %s661_s13 = smov 0  }
   0x4   :  { %s663_s14 = smov 0   ;;  %s665_s15 = smov 0  }
   0x5   :  { %s667_s16 = smov 0   ;;  %s669_s17 = smov 0  }
   0x6 LB: > { %s434_s18 = sadd.s32 4294967295, %s633_s17   ;;  %s435_s19 = sadd.s32 4294967294, %s633_s17   ;;  %s633_s17 = sphi %s669_s17, %s19_s17   ;;  %s629_s16 = sphi %s667_s16, %s858_s16   ;;  %s625_s15 = sphi %s665_s15, %s857_s15   ;;  %s621_s14 = sphi %s663_s14, %s856_s14   ;;  %s617_s13 = sphi %s661_s13, %s855_s13   ;;  %s613_s12 = sphi %s659_s12, %s854_s12  }
   0x7   : > { %s28_s20 = sadd.s32 1, %s629_s16  ;;  %s40_s21 = sadd.s32 1, %s621_s14 }
   0x8   : > { %p29_p0 = scmp.ge.s32.totalorder %s28_s20, 2  ;;  %p47_p1 = scmp.ne.s32.totalorder %s621_s14, %s617_s13 }
   0x9   : > { %p48_p2 = scmp.eq.s32.totalorder %s633_s17, 0  ;;  %p53_p3 = scmp.ne.s32.totalorder %s617_s13, %s613_s12 }
   0xa   : > { %s860_s20 = smov (%p29_p0, %s28_s20), 0  ;;  %p54_p5 = scmp.eq.s32.totalorder %s434_s18, 0 }
   0xb   : > { %p700_p4 = por %p48_p2, %p47_p1  ;;  %s36_s23 = ssub.s32 %s629_s16, %s860_s20 }
   0xc   : > { %p128_p6 = scmp.eq.s32.totalorder %s434_s18, 1  ;;  %p38_p7 = scmp.eq.s32.totalorder %s36_s23, 0 }
   0xd   : > { %p706_p8 = por %p54_p5, %p53_p3  ;;  %p134_p10 = scmp.eq.s32.totalorder %s435_s19, 1 }
   0xe   : > { %p710_p9 = por %p128_p6, %p47_p1  ;;  %p469_p13 = scmp.lt.s32.totalorder %s633_s17, 2 }
   0xf   : > { %s715_s26 = scalar_select %p38_p7, %s621_s14, %s40_s21  }
  0x10   : > { %s846_s25 = scalar_select %p710_p9, 1, 0 }
  0x11   : > { %p717_p11 = por %p134_p10, %p53_p3  ;;  %s157_s28 = sand.u32 1, %s621_s14  }
  0x12   : > { %s438_s29 = sshll.u32 %s157_s28, 3  ;;  %s439_s30 = sshll.u32 %s629_s16, 7 }
  0x13   : > { %s847_s27 = scalar_select %p717_p11, 1, 0 }
  0x14   : > { %s728_s6 = scalar_lea.hbm %s839_s0, %s439_s30  ;;  %s161_s7 = scalar_lea.vmem [#allocation2], %s438_s29 }
  0x15   : > { %s170_s8 = sshll.u32 %s161_s7, 4  ;;  %p734_p0 = pnand %p469_p13, %p700_p4  ;;  %s730_s8 = int_to_ptr.vmem [resolvable:$true] %s170_s8 }
  0x16   : > { %s158_s10 = scalar_lea.sflag [#allocation3], %s157_s28  ;;  %s521_s11 = scalar_lea.hbm %s728_s6, 128 }
  0x17   : > { %p522_p3 = scmp.ne.s32.totalorder %s728_s6, %s521_s11  ;;  %p523_p5 = pneg %p734_p0 }
  0x18   : > { %s526_s21 = scalar_lea.hbm %s839_s0, 256  ;;  %p527_p4 = scmp.lt.u32.totalorder %s728_s6, %s839_s0 }
  0x19   : > { %p524_p6 = pnand %p523_p5, %p522_p3  ;;  %p528_p10 = scmp.lt.u32.totalorder %s526_s21, %s521_s11 }
  0x1a   : > { %p530_p12 = scmp.lt.u32.totalorder %s521_s11, %s728_s6 }
  0x1b   : > { %p525_p7 = pneg %p524_p6  ;;  %p529_p13 = por %p528_p10, %p527_p4 }
  0x1d   : > { %p531_p1 = por %p530_p12, %p529_p13 }
  0x1f   : > { %p532_p2 = pnand %p531_p1, %p525_p7 }
  0x21   : > { %535 = shalt.err (!%p532_p2)
}
  0x22   : > { %s536_s28 = scalar_lea.vmem %s730_s8, 128  ;;  %s635_s29 = smov [#allocation2]  }
  0x23   : > { %p537_p3 = scmp.ne.s32.totalorder %s730_s8, %s536_s28  ;;  %s541_s30 = sshll.u32 %s635_s29, 4  ;;  %s542_s30 = int_to_ptr.vmem [resolvable:$false] %s541_s30 }
  0x24   : > { %s543_s4 = scalar_lea.vmem %s542_s30, 256  ;;  %p544_p9 = scmp.lt.s32.totalorder %s730_s8, %s542_s30 }
  0x25   : > { %p539_p6 = pnand %p537_p3, %p523_p5  ;;  %p545_p4 = scmp.lt.s32.totalorder %s543_s4, %s536_s28 }
  0x27   : > { %p540_p11 = pneg %p539_p6  ;;  %p546_p10 = por %p545_p4, %p544_p9 }
  0x29   : > { %p547_p12 = pnand %p546_p10, %p540_p11 }
  0x2b   : > { %550 = shalt.err (!%p547_p12)
}
  0x2c   : > { %464 = dma.hbm_to_vmem [thread:$0]  (!%p734_p0), %s728_s6, 128, %s730_s8, %s158_s10  }
  0x2d   : > { %p849_p1 = scmp.lt.s32.totalorder %s633_s17, 3  ;;  %p850_p2 = scmp.ge.s32.totalorder %s633_s17, 1 }
  0x2f   : > { %p187_p5 = pnand %p850_p2, %p849_p1 }
  0x30   : > { %s770_s5 = sand.u32 (!%p187_p5), 1, %s617_s13  }
  0x31   : > { %190 = sbr.rel (%p187_p5) target bundleno = 293 (0x125), region = 32  ;;  %s441_s7 = sshll.u32 (!%p187_p5), %s770_s5, 3 }
  0x32   : > { %s193_s11 = scalar_lea.sflag (!%p187_p5), [#allocation3], %s770_s5  ;;  %s196_s18 = scalar_lea.vmem (!%p187_p5), [#allocation2], %s441_s7 }
  0x38   : > { %604 = dma.done.wait (%p706_p8), %s193_s11, 128  }
  0x39   : > { %606 = vsyncadd (%p706_p8), %s193_s11, 4294967168  ;;  %p229_p9 = scmp.lt.s32.totalorder %s625_s15, 1  ;;  %v636_v0 = vmov 0.0   ;;  %vm637_vm0 = vmmov 0   ;;  %vm241_vm1 = vcmask 1041408   ;;  %vm237_vm2 = vcmask 15360  }
  0x3a   : > { %452 = vmatprep.subr.mxu0 %v636_v0  ;;  %454 = vmatprep.mubr.msk.f32.mxu0 %vm637_vm0, %v636_v0  ;;  %v235_v2 = vld [vmem:[%s841_s2] sm:$0xff]  ;;  %s447_s22 = sshll.u32 %s625_s15, 7  ;;  %s226_s23 = scalar_lea.vmem [#allocation5], %s441_s7 }
  0x3b   : > { %s230_s6 = scalar_select %p229_p9, %s625_s15, 1  ;;  %v315_v3 = vld [vmem:[%s196_s18] sm:$0xff] }
  0x3c   : > { %s334_s28 = sshll.u32 %s226_s23, 4  ;;  %s790_s4 = scalar_lea.hbm %s842_s3, %s447_s22  ;;  %s792_s28 = int_to_ptr.vmem [resolvable:$true] %s334_s28 }
  0x3d   : > { %s443_s8 = sshll.u32 %s230_s6, 1  ;;  %s319_s11 = scalar_lea.sflag [#allocation4], %s770_s5 }
  0x3e   : > { %s234_s19 = scalar_lea.vmem %s840_s1, %s443_s8  ;;  %s551_s6 = scalar_lea.vmem %s792_s28, 128 }
  0x3f   : > { %v236_v1 = vld [vmem:[%s234_s19] sm:$0x3]  ;;  %p552_p8 = scmp.ne.s32.totalorder %s792_s28, %s551_s6  ;;  %p851_p11 = scmp.ne.s32.totalorder %s846_s25, 0 }
  0x40   : > { %453 = vmatpush3.msk.msra.mxu0 %vm241_vm1, %v236_v1  ;;  %s638_s15 = smov [#allocation5]  }
  0x41   : > { %455 = vmatmul.mubr.msk.f32.vlgmr.msra.gmra.mrb[0].mxu0 %vm237_vm2, %v235_v2  ;;  %p553_p0 = pnand %p552_p8, %p851_p11  ;;  %s555_s7 = sshll.u32 %s638_s15, 4  ;;  %s556_s7 = int_to_ptr.vmem [resolvable:$false] %s555_s7 }
  0x42   : > { %s557_s18 = scalar_lea.vmem %s556_s7, 256  ;;  %p558_p13 = scmp.lt.s32.totalorder %s792_s28, %s556_s7 }
  0x43   : > { %p554_p7 = pneg %p553_p0  ;;  %p559_p3 = scmp.lt.s32.totalorder %s557_s18, %s551_s6 }
  0x45   : > { %p560_p6 = por %p559_p3, %p558_p13 }
  0x47   : > { %p561_p4 = pnand %p560_p6, %p554_p7 }
 0x114   : > { %v311_v4 = vpop.f32.mrb[0].mxu0 }
 0x115   : > { %v316_v5 = vadd.f32 %v315_v3, %v311_v4  ;;  %v456_v6 = vpop.f32.mrb[1].mxu0 }
 0x117   : > { %317 = vst [vmem:[%s226_s23] sm:$0xff] %v316_v5 }
 0x118   : > { %564 = shalt.err (!%p561_p4)
}
 0x119   : > { %s565_s5 = scalar_lea.hbm %s790_s4, 128  ;;  %s569_s10 = scalar_lea.hbm %s842_s3, 256 }
 0x11a   : > { %p566_p10 = scmp.ne.s32.totalorder %s790_s4, %s565_s5  ;;  %p570_p2 = scmp.lt.u32.totalorder %s790_s4, %s842_s3 }
 0x11b   : > { %p571_p5 = scmp.lt.u32.totalorder %s569_s10, %s565_s5  ;;  %p573_p8 = scmp.lt.u32.totalorder %s565_s5, %s790_s4 }
 0x11c   : > { %p567_p12 = pnand %p566_p10, %p851_p11 }
 0x11d   : > { %p572_p9 = por %p571_p5, %p570_p2 }
 0x11e   : > { %p568_p1 = pneg %p567_p12 }
 0x11f   : > { %p574_p0 = por %p573_p8, %p572_p9 }
 0x121   : > { %p575_p7 = pnand %p574_p0, %p568_p1 }
 0x123   : > { %578 = shalt.err (!%p575_p7)
}
 0x124   : > { %459 = dma.vmem_to_hbm [thread:$0]  (%p851_p11), %s792_s28, 128, %s790_s4, %s319_s11  }
 0x125 PF: > { %s346_s21 = sand.u32 1, %s613_s12   ;;  %p852_p13 = scmp.ne.s32.totalorder %s847_s27, 0 }
 0x126   : > { %p853_p3 = scmp.ge.s32.totalorder %s633_s17, 2  ;;  %s347_s22 = scalar_lea.sflag [#allocation4], %s346_s21 }
 0x128   : > { %p466_p6 = pnand %p853_p3, %p852_p13 }
 0x12a   : > { %608 = dma.done.wait (!%p466_p6), %s347_s22, 128  }
 0x12b   : > { %610 = vsyncadd (!%p466_p6), %s347_s22, 4294967168  ;;  %s19_s17 = sadd.s32 1, %s633_s17   ;;  %s854_s12 = smov %s617_s13 }
 0x12c   : > { %p16_p4 = scmp.ge.s32.totalorder %s19_s17, 4   ;;  %s855_s13 = smov %s621_s14 }
 0x12d   : > { %s856_s14 = smov %s715_s26  ;;  %s857_s15 = smov %s629_s16 }
 0x12e   : > { %s858_s16 = smov %s860_s20  ;;  %18 = sbr.rel (!%p16_p4) target bundleno = 6 (0x6), region = 80 }
 0x135   :  { %352 = vsyncpa [#allocation3], 1 }
 0x136   :  { %354 = vsyncpa [#allocation3 + $0x1], 1 }
 0x137   :  { %355 = vsyncpa [#allocation4], 1 }
 0x138   :  { %357 = vsyncpa [#allocation4 + $0x1], 1 }

</bundles_post_ra>
